<compile_context>
chip_gen: v5e
topology: v5e:2x2
jax: 0.10.0
libtpu: 0.0.40
codegen_flags: <defaults>
</compile_context>

<pallas_src>
import jax
import jax.numpy as jnp
from jax.experimental import pallas as pl
from jax.experimental.pallas import tpu as pltpu


# ----------------------------- kernel bodies ------------------------------ #

def _attention_body(b_ref, w_ref, x_ref, mask_ref, out_ref, wgt_ref):
    # b_ref:    (1,)        projection bias, SMEM scalar (f32)
    # w_ref:    (1, D)      projection weight, VMEM (constant index map -> hoisted)
    # x_ref:    (TB, L, D)  batch tile of encoder_outputs (native dtype)
    # mask_ref: (TB, L)     multiplicative mask (native dtype) or None
    # out_ref:  (TB, D)     pooled outputs
    # wgt_ref:  (TB, L)     attention weights
    TB, L, D = x_ref.shape
    xb = x_ref[...]                                            # native dtype, no f32 slab

    # energy[b, l] = sum_d w[d] * x[b, l, d]  — MXU batched matvec
    # ('bqd,bkd->bqk' flash pattern with q == 1), f32 accumulation.
    wq = jnp.broadcast_to(w_ref[...].astype(xb.dtype).reshape(1, 1, D), (TB, 1, D))
    energy = jnp.einsum("bqd,bld->bql", wq, xb,
                        preferred_element_type=jnp.float32)[:, 0, :]   # (TB, L) f32
    energy = energy + b_ref[0]                                 # scalar bias from SMEM

    if mask_ref is not None:
        # Module semantics: multiplicative mask on the energies, then softmax.
        energy = energy * mask_ref[...].astype(jnp.float32)

    # Numerically stable softmax over L; reciprocal on the (otherwise idle) EUP.
    m = jnp.max(energy, axis=-1, keepdims=True)                # (TB, 1)
    p = jnp.exp(energy - m)                                    # (TB, L)
    s = jnp.sum(p, axis=-1, keepdims=True)                     # (TB, 1)
    weight = p * pl.reciprocal(s, approx=True)                 # (TB, L)
    wgt_ref[...] = weight.astype(wgt_ref.dtype)

    # pooled[b, d] = sum_l weight[b, l] * x[b, l, d] — MXU ('bqk,bkd->bqd', q == 1).
    wrow = weight.astype(xb.dtype)[:, None, :]                 # (TB, 1, L)
    pooled = jnp.einsum("bql,bld->bqd", wrow, xb,
                        preferred_element_type=jnp.float32)[:, 0, :]   # (TB, D) f32
    out_ref[...] = pooled.astype(out_ref.dtype)


def _self_attention_kernel(b_ref, w_ref, x_ref, mask_ref, out_ref, wgt_ref):
    _attention_body(b_ref, w_ref, x_ref, mask_ref, out_ref, wgt_ref)


def _self_attention_kernel_nomask(b_ref, w_ref, x_ref, out_ref, wgt_ref):
    _attention_body(b_ref, w_ref, x_ref, None, out_ref, wgt_ref)


# ------------------------------ tile policy -------------------------------- #

def _x_tile_target_bytes():
    """Per-step x-tile byte target; v5e keeps smaller tiles (16 MiB default scoped VMEM)."""
    try:
        kind = jax.devices()[0].device_kind.lower()
    except Exception:
        kind = ""
    if "v5 lite" in kind or "v5e" in kind or "v5litepod" in kind:
        return 4 << 20
    return 8 << 20  # v6e (128 MiB VMEM) / v7x (64 MiB VMEM, 2 TensorCores)


def _choose_batch_tile(B, L, D, itemsize):
    """Batch tile: whole batch if small, else a sublane-aligned (x8) tile near target."""
    target = _x_tile_target_bytes()
    row = max(1, L * D * itemsize)
    if B * row <= target:
        tb = B
    else:
        tb = min(B, max(8, (target // row) // 8 * 8))
    # Keep >= 2 grid steps once B is large enough so the "parallel" batch axis
    # can be sharded across megacore / v7x's two TensorCores.
    if tb == B and B >= 16:
        tb = min(B, max(8, ((B + 1) // 2 + 7) // 8 * 8))
    return max(1, tb)


# -------------------------------- wrapper ---------------------------------- #

def self_attention(encoder_outputs, w, b, mask=None):
    """Pallas equivalent of SelfAttention.forward.

    encoder_outputs: (B, L, D)
    w: (1, D) projection weight, b: (1,) projection bias
    mask: optional (B, L) multiplicative mask
    returns: outputs (B, D), weight (B, L)  (same dtype as encoder_outputs)
    """
    x = encoder_outputs
    B, L, D = x.shape
    dtype = x.dtype
    itemsize = jnp.dtype(dtype).itemsize

    w2 = w.reshape(1, D).astype(dtype)          # tiny, shared across all grid steps
    b1 = b.reshape(1).astype(jnp.float32)       # SMEM scalar

    TB = _choose_batch_tile(B, L, D, itemsize)
    grid = (pl.cdiv(B, TB),)                    # no host-side padding; ragged last
                                                # block is masked by the pipeline.

    # Explicit VMEM budget: double-buffered inputs/outputs + margin, clamped to a
    # range safe on v5e (16 MiB default scoped) .. v7x (64 MiB physical).
    mask_item = 0 if mask is None else jnp.dtype(mask.dtype).itemsize
    per_step = (TB * L * D * itemsize            # x tile
                + TB * L * mask_item             # mask tile
                + TB * D * itemsize              # pooled output tile
                + TB * L * itemsize              # weight output tile
                + D * itemsize)                  # projection weight block
    vmem_limit = int(min(max(4 * per_step + (4 << 20), 16 << 20), 48 << 20))

    in_specs = [
        pl.BlockSpec(memory_space=pltpu.MemorySpace.SMEM),       # bias (scalar)
        pl.BlockSpec((1, D), lambda i: (0, 0)),                  # weight (shared)
        pl.BlockSpec((TB, L, D), lambda i: (i, 0, 0)),           # x (batch tile)
    ]
    args = [b1, w2, x]
    if mask is not None:
        in_specs.append(pl.BlockSpec((TB, L), lambda i: (i, 0)))  # mask (native dtype)
        args.append(mask)
        kernel = _self_attention_kernel
    else:
        kernel = _self_attention_kernel_nomask

    out, wgt = pl.pallas_call(
        kernel,
        out_shape=(
            jax.ShapeDtypeStruct((B, D), dtype),
            jax.ShapeDtypeStruct((B, L), dtype),
        ),
        grid_spec=pltpu.PrefetchScalarGridSpec(
            num_scalar_prefetch=0,
            grid=grid,
            in_specs=in_specs,
            out_specs=[
                pl.BlockSpec((TB, D), lambda i: (i, 0)),          # pooled output
                pl.BlockSpec((TB, L), lambda i: (i, 0)),          # attention weight
            ],
        ),
        compiler_params=pltpu.CompilerParams(
            dimension_semantics=("parallel",),
            vmem_limit_bytes=vmem_limit,
        ),
    )(*args)

    return out, wgt


# ------------------------------- reference --------------------------------- #

def _reference(encoder_outputs, w, b, mask=None):
    x = encoder_outputs.astype(jnp.float32)
    energy = jnp.einsum("bld,d->bl", x, w.reshape(-1).astype(jnp.float32)) \
        + b.reshape(()).astype(jnp.float32)
    if mask is not None:
        energy = energy * mask.astype(jnp.float32)
    weight = jax.nn.softmax(energy, axis=-1)
    outputs = jnp.sum(x * weight[..., None], axis=1)
    return outputs, weight


if __name__ == "__main__":
    key = jax.random.PRNGKey(0)
    kx, kw, kb, km = jax.random.split(key, 4)

    B, L, D = 2, 8, 32  # batch, seq, input_dim
    x = jax.random.normal(kx, (B, L, D), dtype=jnp.float32)

    # Deterministic nn.Linear(D, 1)-style init: U(-1/sqrt(D), 1/sqrt(D))
    bound = 1.0 / (D ** 0.5)
    w = jax.random.uniform(kw, (1, D), minval=-bound, maxval=bound, dtype=jnp.float32)
    b = jax.random.uniform(kb, (1,), minval=-bound, maxval=bound, dtype=jnp.float32)

    # Non-trivial multiplicative mask (module semantics: energy * mask)
    mask = jax.random.uniform(km, (B, L), minval=0.5, maxval=1.5, dtype=jnp.float32)

    out, weight = self_attention(x, w, b, mask)
    out_nm, weight_nm = self_attention(x, w, b, None)   # maskless variant
    jax.block_until_ready((out, weight, out_nm, weight_nm))

    ref_out, ref_w = _reference(x, w, b, mask)
    ref_out_nm, ref_w_nm = _reference(x, w, b, None)

    # Tolerance accounts for the approximate EUP reciprocal in the softmax denom.
    tol = 2e-3
    assert out.shape == (B, D) and weight.shape == (B, L)
    assert jnp.allclose(out, ref_out, atol=tol, rtol=tol), "output mismatch vs reference"
    assert jnp.allclose(weight, ref_w, atol=tol, rtol=tol), "weight mismatch vs reference"
    assert jnp.allclose(out_nm, ref_out_nm, atol=tol, rtol=tol), "maskless output mismatch"
    assert jnp.allclose(weight_nm, ref_w_nm, atol=tol, rtol=tol), "maskless weight mismatch"

    print("KERNEL_OK")
</pallas_src>

<mosaic_0001>
module attributes {stable_mosaic.version = 11 : i64} {
  func.func @_self_attention_kernel(%arg0: i32, %arg1: memref<1xf32, #tpu.memory_space<smem>>, %arg2: memref<1x32xf32, #tpu.memory_space<vmem>>, %arg3: memref<2x8x32xf32, #tpu.memory_space<vmem>>, %arg4: memref<2x8xf32, #tpu.memory_space<vmem>>, %arg5: memref<2x32xf32, #tpu.memory_space<vmem>>, %arg6: memref<2x8xf32, #tpu.memory_space<vmem>>) attributes {dimension_semantics = [#tpu.dimension_semantics<parallel>], iteration_bounds = array<i64: 1>, scalar_prefetch = 0 : i64, scratch_operands = 0 : i64, tpu.core_type = #tpu.core_type<tc>, window_params = [{transform_indices = @transform_0, window_bounds = array<i64: 1>}, {pipeline_mode = #tpu.pipeline_mode<synchronous>, transform_indices = @transform_1, window_bounds = array<i64: 1, 32>}, {transform_indices = @transform_2, window_bounds = array<i64: 2, 8, 32>}, {transform_indices = @transform_3, window_bounds = array<i64: 2, 8>}, {transform_indices = @transform_4, window_bounds = array<i64: 2, 32>}, {transform_indices = @transform_5, window_bounds = array<i64: 2, 8>}]} {
    %c0 = arith.constant 0 : index
    %c0_0 = arith.constant 0 : index
    %c0_1 = arith.constant 0 : index
    %0 = vector.load %arg3[%c0, %c0_0, %c0_1] : memref<2x8x32xf32, #tpu.memory_space<vmem>>, vector<2x8x32xf32>
    %c0_2 = arith.constant 0 : index
    %c0_3 = arith.constant 0 : index
    %1 = vector.load %arg2[%c0_2, %c0_3] : memref<1x32xf32, #tpu.memory_space<vmem>>, vector<1x32xf32>
    %2 = vector.shape_cast %1 : vector<1x32xf32> to vector<1x1x32xf32>
    %3 = vector.shape_cast %2 : vector<1x1x32xf32> to vector<1x1x32xf32>
    %4 = vector.broadcast %3 : vector<1x1x32xf32> to vector<2x1x32xf32>
    "tpu.trace_start"() <{level = 10 : i32, message = "bqd,bld->bql"}> : () -> ()
    %cst = arith.constant dense<0.000000e+00> : vector<2x1x8xf32>
    %5 = tpu.matmul %4, %0, %cst {dimension_numbers = #tpu.dot_dimension_numbers<[2], [2], [1], [1], [0, 0, 0, 1, 1, 1], [0], [0]>} : vector<2x1x32xf32>, vector<2x8x32xf32>, vector<2x1x8xf32> -> vector<2x1x8xf32>
    "tpu.trace_stop"() : () -> ()
    %6 = vector.shape_cast %5 : vector<2x1x8xf32> to vector<2x8xf32>
    %c0_4 = arith.constant 0 : index
    %7 = memref.load %arg1[%c0_4] : memref<1xf32, #tpu.memory_space<smem>>
    %8 = vector.broadcast %7 : f32 to vector<2x8xf32>
    %9 = arith.addf %6, %8 : vector<2x8xf32>
    %c0_5 = arith.constant 0 : index
    %c0_6 = arith.constant 0 : index
    %10 = vector.load %arg4[%c0_5, %c0_6] : memref<2x8xf32, #tpu.memory_space<vmem>>, vector<2x8xf32>
    %11 = arith.mulf %9, %10 : vector<2x8xf32>
    %cst_7 = arith.constant dense<0xFF800000> : vector<2xf32>
    %12 = vector.multi_reduction <maximumf>, %11, %cst_7 [1] : vector<2x8xf32> to vector<2xf32>
    %13 = vector.shape_cast %12 : vector<2xf32> to vector<2x1xf32>
    %14 = vector.broadcast %13 : vector<2x1xf32> to vector<2x8xf32>
    %15 = arith.subf %11, %14 : vector<2x8xf32>
    %16 = math.exp %15 : vector<2x8xf32>
    %cst_8 = arith.constant dense<0.000000e+00> : vector<2xf32>
    %17 = vector.multi_reduction <add>, %16, %cst_8 [1] : vector<2x8xf32> to vector<2xf32>
    %18 = vector.shape_cast %17 : vector<2xf32> to vector<2x1xf32>
    %19 = tpu.reciprocal %18 {approx = true} : vector<2x1xf32> -> vector<2x1xf32>
    %20 = vector.broadcast %19 : vector<2x1xf32> to vector<2x8xf32>
    %21 = arith.mulf %16, %20 : vector<2x8xf32>
    %c0_9 = arith.constant 0 : index
    %c0_10 = arith.constant 0 : index
    %22 = vector.load %arg6[%c0_9, %c0_10] : memref<2x8xf32, #tpu.memory_space<vmem>>, vector<2x8xf32>
    tpu.vector_store %arg6[%c0_9, %c0_10], %21 {strides = array<i32>} : memref<2x8xf32, #tpu.memory_space<vmem>>, vector<2x8xf32>,
    %23 = vector.shape_cast %21 : vector<2x8xf32> to vector<2x1x8xf32>
    "tpu.trace_start"() <{level = 10 : i32, message = "bql,bld->bqd"}> : () -> ()
    %cst_11 = arith.constant dense<0.000000e+00> : vector<2x1x32xf32>
    %24 = tpu.matmul %23, %0, %cst_11 {dimension_numbers = #tpu.dot_dimension_numbers<[2], [1], [1], [2], [0, 0, 0, 1, 1, 2], [0], [0]>} : vector<2x1x8xf32>, vector<2x8x32xf32>, vector<2x1x32xf32> -> vector<2x1x32xf32>
    "tpu.trace_stop"() : () -> ()
    %25 = vector.shape_cast %24 : vector<2x1x32xf32> to vector<2x32xf32>
    %c0_12 = arith.constant 0 : index
    %c0_13 = arith.constant 0 : index
    %26 = vector.load %arg5[%c0_12, %c0_13] : memref<2x32xf32, #tpu.memory_space<vmem>>, vector<2x32xf32>
    tpu.vector_store %arg5[%c0_12, %c0_13], %25 {strides = array<i32>} : memref<2x32xf32, #tpu.memory_space<vmem>>, vector<2x32xf32>,
    return
  }
  func.func @transform_0(%arg0: i32) -> i32 {
    %c0_i32 = arith.constant 0 : i32
    %c0_i32_0 = arith.constant 0 : i32
    return %c0_i32 : i32
  }
  func.func @transform_1(%arg0: i32) -> (i32, i32) {
    %c0_i32 = arith.constant 0 : i32
    %c0_i32_0 = arith.constant 0 : i32
    %c0_i32_1 = arith.constant 0 : i32
    return %c0_i32, %c0_i32_0 : i32, i32
  }
  func.func @transform_2(%arg0: i32) -> (i32, i32, i32) {
    %c0_i32 = arith.constant 0 : i32
    %c0_i32_0 = arith.constant 0 : i32
    %c0_i32_1 = arith.constant 0 : i32
    return %arg0, %c0_i32, %c0_i32_0 : i32, i32, i32
  }
  func.func @transform_3(%arg0: i32) -> (i32, i32) {
    %c0_i32 = arith.constant 0 : i32
    %c0_i32_0 = arith.constant 0 : i32
    return %arg0, %c0_i32 : i32, i32
  }
  func.func @transform_4(%arg0: i32) -> (i32, i32) {
    %c0_i32 = arith.constant 0 : i32
    %c0_i32_0 = arith.constant 0 : i32
    return %arg0, %c0_i32 : i32, i32
  }
  func.func @transform_5(%arg0: i32) -> (i32, i32) {
    %c0_i32 = arith.constant 0 : i32
    %c0_i32_0 = arith.constant 0 : i32
    return %arg0, %c0_i32 : i32, i32
  }
}

</mosaic_0001>

<bundles_post_ra>
// kernel: tpu_custom_call.1
= control target key start
LH: loop header
LB: loop body
LE: loop exit
PB: predicated region body
PF: predicated region fallthrough
CT: control target
= control target key end

     0   :  { %12 = vsyncpa [#allocation4], 0  ;;  %s383_s0 = inlined_call_operand.<no memory space> [shape: f32[1], index: 0, kind: input, shape index: {}]   ;;  %s384_s1 = inlined_call_operand.vmem [shape: f32[1,32], index: 1, kind: input, shape index: {}]   ;;  %s385_s2 = inlined_call_operand.hbm [shape: f32[2,8,32], index: 2, kind: input, shape index: {}]   ;;  %s386_s3 = inlined_call_operand.vmem [shape: f32[2,8], index: 3, kind: input, shape index: {}]   ;;  %s387_s4 = inlined_call_operand.hbm [shape: f32[2,32], index: 4, kind: output, shape index: {0}]   ;;  %s388_s5 = inlined_call_operand.hbm [shape: f32[2,8], index: 5, kind: output, shape index: {1}]  }
   0x1   :  { %13 = vsyncpa [#allocation5], 0 }
   0x2   :  { %14 = vsyncpa [#allocation8], 0  ;;  %s23_s20 = sshll.u32 %s385_s2, 4  ;;  %s323_s21 = smov [#allocation3]   ;;  %s24_s20 = int_to_ptr.hbm [resolvable:$true] %s23_s20 }
   0x3   :  { %s25_s22 = sshll.u32 %s323_s21, 4  ;;  %s324_s23 = smov 128   ;;  %s26_s22 = int_to_ptr.vmem [resolvable:$true] %s25_s22 }
   0x4   :  { %s325_s24 = smov 8  }
   0x5   :  { %31 = dma.hbm_to_vmem [thread:$0]  %s24_s20, 256, %s26_s22, [#allocation4], %s324_s23, %s324_s23, %s325_s24  }
   0x6   :  { %317 = dma.done.wait [#allocation4], 256  }
   0x7   :  { %318 = vsyncadd [#allocation4], 4294967040  ;;  %vm41_vm0 = vcmask 261120   ;;  %v39_v0 = vld [vmem:[#allocation3 + $0x8] sm:$0xff]  ;;  %v38_v1 = vld [vmem:[#allocation3] sm:$0xff]  ;;  %v92_v4 = vstv %s383_s0  ;;  %vm105_vm1 = vcmask 1041409  }
   0x8   :  { %230 = vmatpush.xpose.msk.msra.mxu1 %vm41_vm0, %v39_v0  ;;  %228 = vmatpush.xpose.msk.msra.mxu0 %vm41_vm0, %v38_v1  ;;  %v40_v2 = vld [vmem:[%s384_s1] sm:$0x1]  ;;  %vm108_vm2 = vcmask 58368   ;;  %vm143_vm3 = vcmask 64512   ;;  %s326_s0 = smov [#allocation7]   ;;  %s213_s6 = sshll.u32 %s388_s5, 4  ;;  %s214_s6 = int_to_ptr.hbm [resolvable:$true] %s213_s6 }
   0x9   :  { %161 = vmatpush.msra.mxu2 %v38_v1  ;;  %183 = vmatpush.msra.mxu3 %v39_v0  ;;  %v95_v3 = vld [vmem:[%s386_s3] sm:$0x3]  ;;  %s211_s1 = sshll.u32 %s326_s0, 4  ;;  %s327_s7 = smov [#allocation6]   ;;  %vm193_vm4 = vcmask 254976   ;;  %s212_s1 = int_to_ptr.vmem [resolvable:$true] %s211_s1 }
   0xa   :  { %v97_v5 = vrot.slane %v95_v3, 1  ;;  %s200_s8 = sshll.u32 %s327_s7, 4  ;;  %s202_s11 = sshll.u32 %s387_s4, 4  ;;  %s201_s8 = int_to_ptr.vmem [resolvable:$true] %s200_s8  ;;  %s203_s11 = int_to_ptr.hbm [resolvable:$true] %s202_s11 }
   0xb   :  { %231 = vmatmul.msk.f32.vlgmr.msra.gmra.mxu1 %vm41_vm0, %v40_v2  ;;  %229 = vmatmul.msk.f32.vlgmr.msra.gmra.mxu0 %vm41_vm0, %v40_v2 }
  0x88   :  { %v88_v6 = vpop.f32.mrf.mxu1  ;;  %v65_v7 = vpop.f32.mrf.mxu0 }
  0x89   :  { %v94_v8 = vadd.f32 %v92_v4, %v88_v6  ;;  %v93_v9 = vadd.f32 %v92_v4, %v65_v7 }
  0x8b   :  { %v101_v10 = vmul.f32 %v97_v5, %v94_v8  ;;  %v100_v11 = vmul.f32 %v95_v3, %v93_v9 }
  0x8d   :  { %v104_v12 = vrot.slane %v101_v10, 7 }
  0x8f   :  { %v106_v13 = vsel %vm105_vm1, %v104_v12, %v100_v11 }
  0x90   :  { %v109_v14 = vsel %vm108_vm2, %v106_v13, -inf }
  0x91   :  { %110 = vmax.xlane.f32.xlu0 %v109_v14 }
 0x104   :  { %v111_v15 = vpop.xlane.xlu0 %110 }
 0x105   :  { %v113_v16 = vrot.slane %v111_v15, 1  ;;  %v116_v17 = vsub.f32 %v100_v11, %v111_v15 }
 0x107   :  { %v117_v18 = vsub.f32 %v101_v10, %v113_v16  ;;  %v118_v19 = vmul.f32 1.442695, %v116_v17 }
 0x109   :  { %v120_v20 = vmul.f32 1.442695, %v117_v18 }
 0x10b   :  { %239 = vpow2.f32 %v120_v20 }
 0x10c   :  { %241 = vpow2.f32 %v118_v19 }
 0x111   :  { %v240_v21 = vpop.eup %239 }
 0x112   :  { %v124_v22 = vrot.slane %v240_v21, 7  ;;  %v242_v23 = vpop.eup %241 }
 0x114   :  { %v125_v24 = vsel %vm105_vm1, %v124_v22, %v242_v23 }
 0x115   :  { %v127_v25 = vsel %vm108_vm2, %v125_v24, 0.0 }
 0x116   :  { %128 = vadd.xlane.f32.xlu0 %v127_v25 }
 0x189   :  { %v129_v26 = vpop.xlane.xlu0 %128 }
 0x18a   :  { %243 = vrcp.f32 %v129_v26 }
 0x190   :  { %v244_v27 = vpop.eup %243 }
 0x191   :  { %v135_v28 = vmul.f32 %v244_v27, %v242_v23  ;;  %v132_v29 = vrot.slane %v244_v27, 1 }
 0x193   :  { %232 = vmatmul.msk.f32.vlgmr.msra.gmra.mxu2 %vm143_vm3, %v135_v28  ;;  %v136_v30 = vmul.f32 %v240_v21, %v132_v29 }
 0x195   :  { %v139_v31 = vrot.slane %v136_v30, 7  ;;  %233 = vmatmul.msk.f32.vlgmr.msra.gmra.mxu3 %vm143_vm3, %v136_v30 }
 0x197   :  { %v140_v32 = vsel %vm105_vm1, %v139_v31, %v135_v28 }
 0x198   :  { %142 = vst.msk [vmem:[#allocation7] sm:$0x3] %vm108_vm2, %v140_v32 }
 0x199   :  { %216 = dma.vmem_to_hbm [thread:$0]  %s212_s1, 32, %s214_s6, [#allocation8]  }
 0x216   :  { %v163_v35 = vpop.f32.mrf.mxu2 }
 0x218   :  { %v185_v33 = vpop.f32.mrf.mxu3 }
 0x219   :  { %v190_v34 = vrot.slane %v185_v33, 7 }
 0x21b   :  { %v191_v36 = vsel %vm105_vm1, %v190_v34, %v163_v35 }
 0x21c   :  { %194 = vst.msk [vmem:[#allocation6] sm:$0x3] %vm193_vm4, %v191_v36 }
 0x21d   :  { %205 = dma.vmem_to_hbm [thread:$0]  %s201_s8, 32, %s203_s11, [#allocation5]  }
 0x21e   :  { %319 = dma.done.wait [#allocation5], 32  }
 0x21f   :  { %320 = vsyncadd [#allocation5], 4294967264 }
 0x220   :  { %321 = dma.done.wait [#allocation8], 32  }
 0x221   :  { %322 = vsyncadd [#allocation8], 4294967264 }
 0x222   :  { %225 = vsyncpa [#allocation4], 1 }
 0x223   :  { %226 = vsyncpa [#allocation5], 1 }
 0x224   :  { %227 = vsyncpa [#allocation8], 1 }

</bundles_post_ra>
